<compile_context>
chip_gen: v5e
topology: v5e:2x2
jax: 0.10.0
libtpu: 0.0.40
codegen_flags: <defaults>
</compile_context>

<pallas_src>
import functools
import math

import jax
import jax.numpy as jnp
from jax import lax
from jax.experimental import pallas as pl
from jax.experimental.pallas import tpu as pltpu


LANE = 128          # lane width -> feature dims padded to multiples of this
SUBLANE = 16        # bf16 packs 2 rows / sublane -> batch tiles multiple of 16
_NEG_LOGVAR_PAD = -1e30   # exp(0.5 * pad) == 0.0 exactly -> padded samples are 0


# ------------------------------- helpers -------------------------------------
def _round_up(n, m):
    return ((n + m - 1) // m) * m


def _pad_to(a, axis, target, value=0.0):
    pad = target - a.shape[axis]
    if pad == 0:
        return a
    widths = [(0, 0)] * a.ndim
    widths[axis] = (0, pad)
    return jnp.pad(a, widths, constant_values=value)


def _vmem_capacity_bytes():
    try:
        return int(pltpu.get_tpu_info().vmem_capacity_bytes)
    except Exception:
        return 128 * 1024 * 1024  # v5e / v6e physical VMEM


def _resident_spec(block_shape, index_map):
    """BlockSpec for a grid-invariant, VMEM-resident operand.

    Single-buffered (pl.Buffered(1)) when supported: the index_map is constant
    in the grid index, so a second pipeline buffer would only waste VMEM.
    """
    if hasattr(pl, "Buffered"):
        try:
            return pl.BlockSpec(block_shape, index_map,
                                pipeline_mode=pl.Buffered(1))
        except TypeError:
            pass
    return pl.BlockSpec(block_shape, index_map)


# ----------------------------- Pallas kernels ---------------------------------
def _mlp_body(x_ref, w_in_ref, b_in_ref, w_bb_ref, b_bb_ref, w_h_ref, b_h_ref,
              o_ref):
    cdt = w_in_ref.dtype  # MXU operand dtype (f32 or bf16); accumulation is f32.

    h = jnp.dot(x_ref[...], w_in_ref[...], preferred_element_type=jnp.float32)
    h = jnp.maximum(h + b_in_ref[...], 0.0).astype(cdt)

    if w_bb_ref is not None:
        # Static unroll over backbone layers; w_bb_ref[l] is a cheap VMEM view.
        for l in range(w_bb_ref.shape[0]):
            h = jnp.dot(h, w_bb_ref[l], preferred_element_type=jnp.float32)
            h = jnp.maximum(h + b_bb_ref[l], 0.0).astype(cdt)

    out = jnp.dot(h, w_h_ref[...], preferred_element_type=jnp.float32) + b_h_ref[...]
    o_ref[...] = out.astype(o_ref.dtype)


def _mlp_kernel_backbone(head_ref, x_ref, w_in_ref, b_in_ref, w_bb_ref,
                         b_bb_ref, w_h_ref, b_h_ref, o_ref):
    del head_ref  # head selection is done in the BlockSpec index_maps
    _mlp_body(x_ref, w_in_ref, b_in_ref, w_bb_ref, b_bb_ref, w_h_ref, b_h_ref,
              o_ref)


def _mlp_kernel_no_backbone(head_ref, x_ref, w_in_ref, b_in_ref, w_h_ref,
                            b_h_ref, o_ref):
    del head_ref
    _mlp_body(x_ref, w_in_ref, b_in_ref, None, None, w_h_ref, b_h_ref, o_ref)


def _pallas_mlp(x, w_in_p, b_in_p, w_bb_p, b_bb_p, w_h_p, b_h_p, head_arr,
                output_dim):
    """Run the padded, pre-cast MLP weights through the Pallas kernel."""
    compute_dtype = w_in_p.dtype
    B = x.shape[0]
    D_p, H_p = w_in_p.shape
    n_heads, _, O_p = w_h_p.shape
    L = 0 if w_bb_p is None else w_bb_p.shape[0]
    cbytes = jnp.dtype(compute_dtype).itemsize

    # --- batch tile sizing -----------------------------------------------
    # Weights counted x2 (conservative in case the single-buffer hint is
    # ignored) + double-buffered x/out tiles + live activations per row.
    weight_bytes = 2 * ((D_p * H_p + L * H_p * H_p + H_p * O_p) * cbytes
                        + ((1 + L) * H_p + O_p) * 4)
    row_bytes = (2 * D_p * cbytes      # double-buffered x tile
                 + 2 * O_p * 4         # double-buffered out tile
                 + 3 * H_p * 4         # f32 accumulator / bias-add temporaries
                 + H_p * cbytes)       # live compute-dtype activation
    vmem_cap = int(_vmem_capacity_bytes() * 0.85)
    budget = vmem_cap - weight_bytes - (4 << 20)
    tile_cap = max(SUBLANE,
                   min(2048, (budget // max(row_bytes, 1)) // SUBLANE * SUBLANE))

    if B >= 2 * SUBLANE:
        # At least two batch tiles so the "parallel" axis can shard across
        # both TensorCores on v7x (megacore); larger B fills up to tile_cap.
        target = _round_up(pl.cdiv(B, 2), SUBLANE)
    else:
        target = _round_up(B, SUBLANE)
    tile_b = int(max(SUBLANE, min(tile_cap, target)))
    b_pad = _round_up(B, tile_b)
    grid_b = b_pad // tile_b

    xp = _pad_to(_pad_to(x, 1, D_p), 0, b_pad).astype(compute_dtype)

    vmem_limit = int(min(vmem_cap,
                         max(32 << 20,
                             weight_bytes + tile_b * row_bytes + (4 << 20))))

    in_specs = [
        pl.BlockSpec((tile_b, D_p), lambda i, h: (i, 0)),            # x tile
        _resident_spec((D_p, H_p), lambda i, h: (0, 0)),             # W_in
        _resident_spec((1, H_p), lambda i, h: (0, 0)),               # b_in
    ]
    inputs = [xp, w_in_p, b_in_p]
    if L > 0:
        in_specs += [
            _resident_spec((L, H_p, H_p), lambda i, h: (0, 0, 0)),   # W_bb stack
            _resident_spec((L, 1, H_p), lambda i, h: (0, 0, 0)),     # b_bb stack
        ]
        inputs += [w_bb_p, b_bb_p]
        kernel = _mlp_kernel_backbone
    else:
        kernel = _mlp_kernel_no_backbone
    in_specs += [
        _resident_spec((None, H_p, O_p), lambda i, h: (h[0], 0, 0)),  # W_head[h]
        _resident_spec((None, 1, O_p), lambda i, h: (h[0], 0, 0)),    # b_head[h]
    ]
    inputs += [w_h_p, b_h_p]

    grid_spec = pltpu.PrefetchScalarGridSpec(
        num_scalar_prefetch=1,
        grid=(grid_b,),
        in_specs=in_specs,
        out_specs=pl.BlockSpec((tile_b, O_p), lambda i, h: (i, 0)),
    )

    out = pl.pallas_call(
        kernel,
        out_shape=jax.ShapeDtypeStruct((b_pad, O_p), jnp.float32),
        grid_spec=grid_spec,
        compiler_params=pltpu.CompilerParams(
            dimension_semantics=("parallel",),
            vmem_limit_bytes=vmem_limit,
        ),
    )(head_arr, *inputs)
    return out[:B, :output_dim]


# --------------------------- parameter handling -------------------------------
def init_params(key, input_dim, output_dim, num_layers, hidden_dim, num_heads):
    """Replica of _init_variational_params: means ~ N(0, 0.1^2),
    logvars = log(0.001), stored concatenated along the last dim."""
    log_small = math.log(0.001)

    def make(k, shape_mean):
        means = 0.1 * jax.random.normal(k, shape_mean, dtype=jnp.float32)
        logvars = jnp.full(shape_mean, log_small, dtype=jnp.float32)
        return jnp.concatenate([means, logvars], axis=-1)

    ks = jax.random.split(key, 6)
    return {
        "input_proj_weights_params": make(ks[0], (input_dim, hidden_dim)),
        "input_proj_biases_params": make(ks[1], (hidden_dim,)),
        "backbone_weights_params": make(ks[2], (num_layers - 1, hidden_dim, hidden_dim)),
        "backbone_biases_params": make(ks[3], (num_layers - 1, hidden_dim)),
        "head_weights_params": make(ks[4], (num_heads, hidden_dim, output_dim)),
        "head_biases_params": make(ks[5], (num_heads, output_dim)),
    }


def _chunk(p):
    half = p.shape[-1] // 2
    return p[..., :half], p[..., half:]


def prepare_params(params, compute_dtype=jnp.bfloat16):
    """Pad (lane-dense, mathematically exact) and cast the variational
    parameters ONCE, so the per-call forward does not re-pad / re-cast the
    weights through HBM. Padded logvars use -1e30 so exp(0.5*lv) == 0 and
    reparameterized samples stay exactly zero in the padded region."""
    ipw_m, ipw_lv = _chunk(params["input_proj_weights_params"])
    ipb_m, ipb_lv = _chunk(params["input_proj_biases_params"])
    bbw_m, bbw_lv = _chunk(params["backbone_weights_params"])
    bbb_m, bbb_lv = _chunk(params["backbone_biases_params"])
    hw_m, hw_lv = _chunk(params["head_weights_params"])
    hb_m, hb_lv = _chunk(params["head_biases_params"])

    input_dim, hidden_dim = ipw_m.shape
    num_backbone = bbw_m.shape[0]
    num_heads, _, output_dim = hw_m.shape

    d_p = _round_up(input_dim, LANE)
    h_p = _round_up(hidden_dim, LANE)
    o_p = _round_up(output_dim, LANE)

    def pad_w(m, lv, rows, cols):
        m_p = _pad_to(_pad_to(m, m.ndim - 2, rows), m.ndim - 1, cols)
        lv_p = _pad_to(_pad_to(lv, lv.ndim - 2, rows, _NEG_LOGVAR_PAD),
                       lv.ndim - 1, cols, _NEG_LOGVAR_PAD)
        return m_p.astype(jnp.float32), lv_p.astype(jnp.float32)

    def pad_b(m, lv, cols):
        m_p = _pad_to(m, m.ndim - 1, cols)
        lv_p = _pad_to(lv, lv.ndim - 1, cols, _NEG_LOGVAR_PAD)
        return m_p.astype(jnp.float32), lv_p.astype(jnp.float32)

    w_in_m, w_in_lv = pad_w(ipw_m, ipw_lv, d_p, h_p)
    b_in_m, b_in_lv = pad_b(ipb_m.reshape(1, hidden_dim),
                            ipb_lv.reshape(1, hidden_dim), h_p)
    w_h_m, w_h_lv = pad_w(hw_m, hw_lv, h_p, o_p)
    b_h_m, b_h_lv = pad_b(hb_m.reshape(num_heads, 1, output_dim),
                          hb_lv.reshape(num_heads, 1, output_dim), o_p)
    if num_backbone > 0:
        w_bb_m, w_bb_lv = pad_w(bbw_m, bbw_lv, h_p, h_p)
        b_bb_m, b_bb_lv = pad_b(bbb_m.reshape(num_backbone, 1, hidden_dim),
                                bbb_lv.reshape(num_backbone, 1, hidden_dim), h_p)
    else:
        w_bb_m = w_bb_lv = b_bb_m = b_bb_lv = None

    det = {
        "w_in": w_in_m.astype(compute_dtype),
        "b_in": b_in_m,                                             # biases f32
        "w_bb": None if num_backbone == 0 else w_bb_m.astype(compute_dtype),
        "b_bb": b_bb_m,
        "w_h": w_h_m.astype(compute_dtype),
        "b_h": b_h_m,
    }
    means = {"w_in": w_in_m, "b_in": b_in_m, "w_bb": w_bb_m, "b_bb": b_bb_m,
             "w_h": w_h_m, "b_h": b_h_m}
    logvars = {"w_in": w_in_lv, "b_in": b_in_lv, "w_bb": w_bb_lv,
               "b_bb": b_bb_lv, "w_h": w_h_lv, "b_h": b_h_lv}
    return {"det": det, "means": means, "logvars": logvars}


# -------------------------------- forward --------------------------------------
@functools.partial(jax.jit, static_argnames=("output_dim", "deterministic"))
def mean_field_forward(prepared, x, head_idx, *, output_dim, deterministic=True,
                       key=None):
    """Equivalent of DiscriminativeMeanField.forward."""
    det = prepared["det"]
    num_heads = det["w_h"].shape[0]
    head = jnp.clip(jnp.asarray(head_idx, jnp.int32), 0, num_heads - 1)

    if deterministic:
        return _pallas_mlp(x, det["w_in"], det["b_in"], det["w_bb"], det["b_bb"],
                           det["w_h"], det["b_h"], head.reshape((1,)),
                           output_dim)

    if key is None:
        raise ValueError("stochastic forward requires a PRNG key")
    cdt = det["w_in"].dtype
    means, logvars = prepared["means"], prepared["logvars"]
    ks = jax.random.split(key, 6)

    def sample(k, m, lv, dtype):
        eps = jax.random.normal(k, m.shape, dtype=m.dtype)
        return (m + jnp.exp(0.5 * lv) * eps).astype(dtype)

    w_in = sample(ks[0], means["w_in"], logvars["w_in"], cdt)
    b_in = sample(ks[1], means["b_in"], logvars["b_in"], jnp.float32)
    if means["w_bb"] is None:
        w_bb = b_bb = None
    else:
        w_bb = sample(ks[2], means["w_bb"], logvars["w_bb"], cdt)
        b_bb = sample(ks[3], means["b_bb"], logvars["b_bb"], jnp.float32)
    # Only the selected head is sampled (unused heads never reach the kernel).
    w_h = sample(ks[4],
                 lax.dynamic_index_in_dim(means["w_h"], head, 0, keepdims=True),
                 lax.dynamic_index_in_dim(logvars["w_h"], head, 0, keepdims=True),
                 cdt)
    b_h = sample(ks[5],
                 lax.dynamic_index_in_dim(means["b_h"], head, 0, keepdims=True),
                 lax.dynamic_index_in_dim(logvars["b_h"], head, 0, keepdims=True),
                 jnp.float32)
    head0 = jnp.zeros((1,), jnp.int32)
    # TODO(synk): draw the reparameterization noise in-kernel with
    # pltpu.prng_seed / pltpu.prng_random_bits to avoid the sampled-weight HBM
    # round trip entirely.
    return _pallas_mlp(x, w_in, b_in, w_bb, b_bb, w_h, b_h, head0, output_dim)


# -------------------------------- reference -----------------------------------
def _reference_forward(x, w_in, b_in, w_bb, b_bb, w_h, b_h):
    h = jnp.maximum(x @ w_in + b_in, 0.0)
    for l in range(w_bb.shape[0]):
        h = jnp.maximum(h @ w_bb[l] + b_bb[l], 0.0)
    return h @ w_h + b_h


# ----------------------------------- main --------------------------------------
if __name__ == "__main__":
    input_dim, output_dim = 16, 8
    num_layers, hidden_dim, num_heads = 3, 32, 2
    batch = 8
    head_idx = 1

    key = jax.random.PRNGKey(0)
    k_params, k_x, k_sample = jax.random.split(key, 3)

    params = init_params(k_params, input_dim, output_dim, num_layers,
                         hidden_dim, num_heads)
    x = jax.random.normal(k_x, (batch, input_dim), dtype=jnp.float32)

    # f32 MXU operands: near-exact check against the plain-JAX reference.
    prep_f32 = prepare_params(params, compute_dtype=jnp.float32)
    out_det = mean_field_forward(prep_f32, x, head_idx, output_dim=output_dim,
                                 deterministic=True)
    out_det = jax.block_until_ready(out_det)

    # Default fast path: bf16 MXU operands, f32 accumulation (v5e/v6e/v7x).
    prep_bf16 = prepare_params(params)
    out_bf16 = mean_field_forward(prep_bf16, x, head_idx, output_dim=output_dim,
                                  deterministic=True)
    out_bf16 = jax.block_until_ready(out_bf16)

    # Stochastic forward (reparameterized weights) through the same kernel.
    out_sto = mean_field_forward(prep_f32, x, head_idx, output_dim=output_dim,
                                 deterministic=False, key=k_sample)
    out_sto = jax.block_until_ready(out_sto)

    # Verify the deterministic path against a plain-JAX reference (unpadded).
    ipw_m, _ = _chunk(params["input_proj_weights_params"])
    ipb_m, _ = _chunk(params["input_proj_biases_params"])
    bbw_m, _ = _chunk(params["backbone_weights_params"])
    bbb_m, _ = _chunk(params["backbone_biases_params"])
    hw_m, _ = _chunk(params["head_weights_params"])
    hb_m, _ = _chunk(params["head_biases_params"])
    ref = _reference_forward(x, ipw_m, ipb_m, bbw_m, bbb_m,
                             hw_m[head_idx], hb_m[head_idx])

    assert out_det.shape == (batch, output_dim)
    assert out_bf16.shape == (batch, output_dim)
    assert out_sto.shape == (batch, output_dim)
    assert bool(jnp.allclose(out_det, ref, atol=5e-3, rtol=2e-2))
    assert bool(jnp.allclose(out_bf16, ref, atol=1e-1, rtol=1e-1))
    assert bool(jnp.all(jnp.isfinite(out_sto)))

    print("KERNEL_OK")
</pallas_src>

<mosaic_0001>
module attributes {stable_mosaic.version = 11 : i64} {
  func.func @_mlp_kernel_backbone(%arg0: i32, %arg1: memref<1xi32, #tpu.memory_space<smem>>, %arg2: memref<16x128xf32, #tpu.memory_space<vmem>>, %arg3: memref<128x128xf32, #tpu.memory_space<vmem>>, %arg4: memref<1x128xf32, #tpu.memory_space<vmem>>, %arg5: memref<2x128x128xf32, #tpu.memory_space<vmem>>, %arg6: memref<2x1x128xf32, #tpu.memory_space<vmem>>, %arg7: memref<1x128x128xf32, #tpu.memory_space<vmem>>, %arg8: memref<1x1x128xf32, #tpu.memory_space<vmem>>, %arg9: memref<16x128xf32, #tpu.memory_space<vmem>>) attributes {dimension_semantics = [#tpu.dimension_semantics<parallel>], iteration_bounds = array<i64: 1>, scalar_prefetch = 1 : i64, scratch_operands = 0 : i64, tpu.core_type = #tpu.core_type<tc>, window_params = [{transform_indices = @transform_0, window_bounds = array<i64: 16, 128>}, {pipeline_mode = #tpu.pipeline_mode<synchronous>, transform_indices = @transform_1, window_bounds = array<i64: 128, 128>}, {pipeline_mode = #tpu.pipeline_mode<synchronous>, transform_indices = @transform_2, window_bounds = array<i64: 1, 128>}, {pipeline_mode = #tpu.pipeline_mode<synchronous>, transform_indices = @transform_3, window_bounds = array<i64: 2, 128, 128>}, {pipeline_mode = #tpu.pipeline_mode<synchronous>, transform_indices = @transform_4, window_bounds = array<i64: 2, 1, 128>}, {pipeline_mode = #tpu.pipeline_mode<synchronous>, transform_indices = @transform_5, window_bounds = array<i64: 1, 128, 128>}, {pipeline_mode = #tpu.pipeline_mode<synchronous>, transform_indices = @transform_6, window_bounds = array<i64: 1, 1, 128>}, {transform_indices = @transform_7, window_bounds = array<i64: 16, 128>}]} {
    %c0 = arith.constant 0 : index
    %c0_0 = arith.constant 0 : index
    %0 = vector.load %arg2[%c0, %c0_0] : memref<16x128xf32, #tpu.memory_space<vmem>>, vector<16x128xf32>
    %c0_1 = arith.constant 0 : index
    %c0_2 = arith.constant 0 : index
    %1 = vector.load %arg3[%c0_1, %c0_2] : memref<128x128xf32, #tpu.memory_space<vmem>>, vector<128x128xf32>
    %cst = arith.constant dense<0.000000e+00> : vector<16x128xf32>
    %2 = tpu.matmul %0, %1, %cst {dimension_numbers = #tpu.dot_dimension_numbers<[1], [0], [0], [1], [0, 0, 1, 1], [], []>} : vector<16x128xf32>, vector<128x128xf32>, vector<16x128xf32> -> vector<16x128xf32>
    %c0_3 = arith.constant 0 : index
    %c0_4 = arith.constant 0 : index
    %3 = vector.load %arg4[%c0_3, %c0_4] : memref<1x128xf32, #tpu.memory_space<vmem>>, vector<1x128xf32>
    %4 = vector.broadcast %3 : vector<1x128xf32> to vector<16x128xf32>
    %5 = arith.addf %2, %4 : vector<16x128xf32>
    %cst_5 = arith.constant 0.000000e+00 : f32
    %6 = vector.broadcast %cst_5 : f32 to vector<16x128xf32>
    %7 = arith.maximumf %5, %6 : vector<16x128xf32>
    %c0_6 = arith.constant 0 : index
    %c0_7 = arith.constant 0 : index
    %c0_8 = arith.constant 0 : index
    %8 = vector.load %arg5[%c0_6, %c0_7, %c0_8] : memref<2x128x128xf32, #tpu.memory_space<vmem>>, vector<1x128x128xf32>
    %9 = vector.shape_cast %8 : vector<1x128x128xf32> to vector<128x128xf32>
    %cst_9 = arith.constant dense<0.000000e+00> : vector<16x128xf32>
    %10 = tpu.matmul %7, %9, %cst_9 {dimension_numbers = #tpu.dot_dimension_numbers<[1], [0], [0], [1], [0, 0, 1, 1], [], []>} : vector<16x128xf32>, vector<128x128xf32>, vector<16x128xf32> -> vector<16x128xf32>
    %c0_10 = arith.constant 0 : index
    %c0_11 = arith.constant 0 : index
    %c0_12 = arith.constant 0 : index
    %11 = vector.load %arg6[%c0_10, %c0_11, %c0_12] : memref<2x1x128xf32, #tpu.memory_space<vmem>>, vector<1x1x128xf32>
    %12 = vector.shape_cast %11 : vector<1x1x128xf32> to vector<1x128xf32>
    %13 = vector.broadcast %12 : vector<1x128xf32> to vector<16x128xf32>
    %14 = arith.addf %10, %13 : vector<16x128xf32>
    %cst_13 = arith.constant 0.000000e+00 : f32
    %15 = vector.broadcast %cst_13 : f32 to vector<16x128xf32>
    %16 = arith.maximumf %14, %15 : vector<16x128xf32>
    %c1 = arith.constant 1 : index
    %c0_14 = arith.constant 0 : index
    %c0_15 = arith.constant 0 : index
    %17 = vector.load %arg5[%c1, %c0_14, %c0_15] : memref<2x128x128xf32, #tpu.memory_space<vmem>>, vector<1x128x128xf32>
    %18 = vector.shape_cast %17 : vector<1x128x128xf32> to vector<128x128xf32>
    %cst_16 = arith.constant dense<0.000000e+00> : vector<16x128xf32>
    %19 = tpu.matmul %16, %18, %cst_16 {dimension_numbers = #tpu.dot_dimension_numbers<[1], [0], [0], [1], [0, 0, 1, 1], [], []>} : vector<16x128xf32>, vector<128x128xf32>, vector<16x128xf32> -> vector<16x128xf32>
    %c1_17 = arith.constant 1 : index
    %c0_18 = arith.constant 0 : index
    %c0_19 = arith.constant 0 : index
    %20 = vector.load %arg6[%c1_17, %c0_18, %c0_19] : memref<2x1x128xf32, #tpu.memory_space<vmem>>, vector<1x1x128xf32>
    %21 = vector.shape_cast %20 : vector<1x1x128xf32> to vector<1x128xf32>
    %22 = vector.broadcast %21 : vector<1x128xf32> to vector<16x128xf32>
    %23 = arith.addf %19, %22 : vector<16x128xf32>
    %cst_20 = arith.constant 0.000000e+00 : f32
    %24 = vector.broadcast %cst_20 : f32 to vector<16x128xf32>
    %25 = arith.maximumf %23, %24 : vector<16x128xf32>
    %c0_21 = arith.constant 0 : index
    %c0_22 = arith.constant 0 : index
    %c0_23 = arith.constant 0 : index
    %26 = vector.load %arg7[%c0_21, %c0_22, %c0_23] : memref<1x128x128xf32, #tpu.memory_space<vmem>>, vector<1x128x128xf32>
    %27 = vector.shape_cast %26 : vector<1x128x128xf32> to vector<128x128xf32>
    %cst_24 = arith.constant dense<0.000000e+00> : vector<16x128xf32>
    %28 = tpu.matmul %25, %27, %cst_24 {dimension_numbers = #tpu.dot_dimension_numbers<[1], [0], [0], [1], [0, 0, 1, 1], [], []>} : vector<16x128xf32>, vector<128x128xf32>, vector<16x128xf32> -> vector<16x128xf32>
    %c0_25 = arith.constant 0 : index
    %c0_26 = arith.constant 0 : index
    %c0_27 = arith.constant 0 : index
    %29 = vector.load %arg8[%c0_25, %c0_26, %c0_27] : memref<1x1x128xf32, #tpu.memory_space<vmem>>, vector<1x1x128xf32>
    %30 = vector.shape_cast %29 : vector<1x1x128xf32> to vector<1x128xf32>
    %31 = vector.broadcast %30 : vector<1x128xf32> to vector<16x128xf32>
    %32 = arith.addf %28, %31 : vector<16x128xf32>
    %c0_28 = arith.constant 0 : index
    %c0_29 = arith.constant 0 : index
    %33 = vector.load %arg9[%c0_28, %c0_29] : memref<16x128xf32, #tpu.memory_space<vmem>>, vector<16x128xf32>
    tpu.vector_store %arg9[%c0_28, %c0_29], %32 {strides = array<i32>} : memref<16x128xf32, #tpu.memory_space<vmem>>, vector<16x128xf32>,
    return
  }
  func.func @transform_0(%arg0: i32, %arg1: memref<1xi32, #tpu.memory_space<smem>>) -> (i32, i32) {
    %c0_i32 = arith.constant 0 : i32
    %c0_i32_0 = arith.constant 0 : i32
    return %arg0, %c0_i32 : i32, i32
  }
  func.func @transform_1(%arg0: i32, %arg1: memref<1xi32, #tpu.memory_space<smem>>) -> (i32, i32) {
    %c0_i32 = arith.constant 0 : i32
    %c0_i32_0 = arith.constant 0 : i32
    %c0_i32_1 = arith.constant 0 : i32
    return %c0_i32, %c0_i32_0 : i32, i32
  }
  func.func @transform_2(%arg0: i32, %arg1: memref<1xi32, #tpu.memory_space<smem>>) -> (i32, i32) {
    %c0_i32 = arith.constant 0 : i32
    %c0_i32_0 = arith.constant 0 : i32
    %c0_i32_1 = arith.constant 0 : i32
    return %c0_i32, %c0_i32_0 : i32, i32
  }
  func.func @transform_3(%arg0: i32, %arg1: memref<1xi32, #tpu.memory_space<smem>>) -> (i32, i32, i32) {
    %c0_i32 = arith.constant 0 : i32
    %c0_i32_0 = arith.constant 0 : i32
    %c0_i32_1 = arith.constant 0 : i32
    %c0_i32_2 = arith.constant 0 : i32
    return %c0_i32, %c0_i32_0, %c0_i32_1 : i32, i32, i32
  }
  func.func @transform_4(%arg0: i32, %arg1: memref<1xi32, #tpu.memory_space<smem>>) -> (i32, i32, i32) {
    %c0_i32 = arith.constant 0 : i32
    %c0_i32_0 = arith.constant 0 : i32
    %c0_i32_1 = arith.constant 0 : i32
    %c0_i32_2 = arith.constant 0 : i32
    return %c0_i32, %c0_i32_0, %c0_i32_1 : i32, i32, i32
  }
  func.func @transform_5(%arg0: i32, %arg1: memref<1xi32, #tpu.memory_space<smem>>) -> (i32, i32, i32) {
    %c0 = arith.constant 0 : index
    %0 = memref.load %arg1[%c0] : memref<1xi32, #tpu.memory_space<smem>>
    %c0_i32 = arith.constant 0 : i32
    %c0_i32_0 = arith.constant 0 : i32
    %c0_i32_1 = arith.constant 0 : i32
    return %0, %c0_i32, %c0_i32_0 : i32, i32, i32
  }
  func.func @transform_6(%arg0: i32, %arg1: memref<1xi32, #tpu.memory_space<smem>>) -> (i32, i32, i32) {
    %c0 = arith.constant 0 : index
    %0 = memref.load %arg1[%c0] : memref<1xi32, #tpu.memory_space<smem>>
    %c0_i32 = arith.constant 0 : i32
    %c0_i32_0 = arith.constant 0 : i32
    %c0_i32_1 = arith.constant 0 : i32
    return %0, %c0_i32, %c0_i32_0 : i32, i32, i32
  }
  func.func @transform_7(%arg0: i32, %arg1: memref<1xi32, #tpu.memory_space<smem>>) -> (i32, i32) {
    %c0_i32 = arith.constant 0 : i32
    %c0_i32_0 = arith.constant 0 : i32
    return %arg0, %c0_i32 : i32, i32
  }
}

</mosaic_0001>

<bundles_post_ra>
// kernel: mean_field_forward.1
= control target key start
LH: loop header
LB: loop body
LE: loop exit
PB: predicated region body
PF: predicated region fallthrough
CT: control target
= control target key end

     0   :  { %14 = vsyncpa [#allocation5], 0  ;;  %s476_s0 = inlined_call_operand.<no memory space> [shape: s32[1], index: 0, kind: input, shape index: {}]   ;;  %s477_s1 = inlined_call_operand.vmem [shape: f32[16,128], index: 1, kind: input, shape index: {}]   ;;  %s478_s2 = inlined_call_operand.hbm [shape: f32[128,128], index: 2, kind: input, shape index: {}]   ;;  %s479_s3 = inlined_call_operand.vmem [shape: f32[1,128], index: 3, kind: input, shape index: {}]   ;;  %s480_s4 = inlined_call_operand.hbm [shape: f32[2,128,128], index: 4, kind: input, shape index: {}]   ;;  %s481_s5 = inlined_call_operand.vmem [shape: f32[2,1,128], index: 5, kind: input, shape index: {}]   ;;  %s482_s6 = inlined_call_operand.hbm [shape: f32[2,128,128], index: 6, kind: input, shape index: {}]   ;;  %s483_s7 = inlined_call_operand.vmem [shape: f32[2,1,128], index: 7, kind: input, shape index: {}]   ;;  %s484_s8 = inlined_call_operand.vmem [shape: f32[16,128], index: 8, kind: output, shape index: {}]  }
   0x1   :  { %15 = vsyncpa [#allocation7], 0  ;;  %s37_s29 = sshll.u32 %s480_s4, 4  ;;  %s378_s30 = smov [#allocation6]   ;;  %s38_s29 = int_to_ptr.hbm [resolvable:$true] %s37_s29 }
   0x2   :  { %s39_s9 = sshll.u32 %s378_s30, 4  ;;  %s22_s12 = sshll.u32 %s478_s2, 4  ;;  %s40_s9 = int_to_ptr.vmem [resolvable:$true] %s39_s9  ;;  %s23_s12 = int_to_ptr.hbm [resolvable:$true] %s22_s12 }
   0x3   :  { %s379_s13 = smov 128   ;;  %s380_s14 = smov 8  }
   0x4   :  { %45 = dma.hbm_to_vmem [thread:$0]  %s38_s29, 4096, %s40_s9, [#allocation7], %s379_s13, %s379_s13, %s380_s14  }
   0x5   :  { %s381_s15 = smov [#allocation4]   ;;  %s292_s19 = sshll.u32 %s476_s0, 7 }
   0x6   :  { %s24_s16 = sshll.u32 %s381_s15, 4  ;;  %s55_s21 = scalar_lea.hbm %s482_s6, %s292_s19  ;;  %s25_s16 = int_to_ptr.vmem [resolvable:$true] %s24_s16 }
   0x7   :  { %30 = dma.hbm_to_vmem [thread:$0]  %s23_s12, 2048, %s25_s16, [#allocation5], %s379_s13, %s379_s13, %s380_s14  }
   0x8   :  { %s56_s22 = sshll.u32 %s55_s21, 4  ;;  %s382_s23 = smov [#allocation8]   ;;  %s57_s22 = int_to_ptr.hbm [resolvable:$true] %s56_s22 }
   0x9   :  { %s58_s2 = sshll.u32 %s382_s23, 4  ;;  %s350_s24 = sshra.s32 %s57_s22, 4  ;;  %s59_s2 = int_to_ptr.vmem [resolvable:$true] %s58_s2  ;;  %s351_s24 = int_to_ptr.hbm [resolvable:$true] %s350_s24 }
   0xa   :  { %s352_s25 = scalar_lea.hbm %s351_s24, 128  ;;  %s354_s28 = scalar_lea.hbm %s482_s6, 256 }
   0xb   :  { %p353_p0 = scmp.ne.s32.totalorder %s351_s24, %s352_s25  ;;  %p355_p1 = scmp.lt.s32.totalorder %s351_s24, %s482_s6 }
   0xc   :  { %p356_p2 = scmp.lt.s32.totalorder %s354_s28, %s352_s25 }
   0xe   :  { %p357_p3 = por %p356_p2, %p355_p1 }
  0x10   :  { %p358_p4 = pnand %p357_p3, %p353_p0 }
  0x12   :  { %361 = shalt.err (!%p358_p4)
}
  0x13   :  { %64 = dma.hbm_to_vmem [thread:$0]  %s57_s22, 2048, %s59_s2, [#allocation7], %s379_s13, %s379_s13, %s380_s14  }
  0x14   :  { %374 = dma.done.wait [#allocation5], 2048  }
  0x15   :  { %375 = vsyncadd [#allocation5], 4294965248 }
  0x16   :  { %376 = dma.done.wait [#allocation7], 6144  }
  0x17   :  { %377 = vsyncadd [#allocation7], 4294961152  ;;  %v111_v0 = vld [vmem:[#allocation4 + $0x78] sm:$0xff]  ;;  %v110_v1 = vld [vmem:[#allocation4 + $0x70] sm:$0xff]  ;;  %p90_p5 = scmp.lt.s32.totalorder %s476_s0, 1 }
  0x18   :  { %116 = vmatpush.msra.mxu0 %v111_v0  ;;  %v109_v2 = vld [vmem:[#allocation4 + $0x68] sm:$0xff]  ;;  %v108_v3 = vld [vmem:[#allocation4 + $0x60] sm:$0xff]  ;;  %v107_v4 = vld [vmem:[#allocation4 + $0x58] sm:$0xff] }
  0x19   :  { %v106_v5 = vld [vmem:[#allocation4 + $0x50] sm:$0xff]  ;;  %v156_v6 = vld [vmem:[#allocation6 + $0x78] sm:$0xff]  ;;  %v105_v8 = vld [vmem:[#allocation4 + $0x48] sm:$0xff]  ;;  %s486_s0 = smov (!%p90_p5, %s476_s0), 1 }
  0x1a   :  { %117 = vmatpush.msra.mxu0 %v110_v1  ;;  %v155_v7 = vld [vmem:[#allocation6 + $0x70] sm:$0xff]  ;;  %161 = vmatpush.msra.mxu1 %v156_v6  ;;  %v154_v9 = vld [vmem:[#allocation6 + $0x68] sm:$0xff]  ;;  %v104_v10 = vld [vmem:[#allocation4 + $0x40] sm:$0xff]  ;;  %s92_s4 = scalar_lea.vmem %s483_s7, %s486_s0 }
  0x1b   :  { %v153_v11 = vld [vmem:[#allocation6 + $0x60] sm:$0xff]  ;;  %v103_v12 = vld [vmem:[#allocation4 + $0x38] sm:$0xff]  ;;  %v102_v14 = vld [vmem:[#allocation4 + $0x30] sm:$0xff] }
  0x1c   :  { %118 = vmatpush.msra.mxu0 %v109_v2  ;;  %162 = vmatpush.msra.mxu1 %v155_v7  ;;  %v152_v13 = vld [vmem:[#allocation6 + $0x58] sm:$0xff]  ;;  %v151_v15 = vld [vmem:[#allocation6 + $0x50] sm:$0xff]  ;;  %v101_v16 = vld [vmem:[#allocation4 + $0x28] sm:$0xff] }
  0x1d   :  { %v150_v17 = vld [vmem:[#allocation6 + $0x48] sm:$0xff]  ;;  %v100_v18 = vld [vmem:[#allocation4 + $0x20] sm:$0xff]  ;;  %v99_v20 = vld [vmem:[#allocation4 + $0x18] sm:$0xff] }
  0x1e   :  { %119 = vmatpush.msra.mxu0 %v108_v3  ;;  %163 = vmatpush.msra.mxu1 %v154_v9  ;;  %v149_v19 = vld [vmem:[#allocation6 + $0x40] sm:$0xff]  ;;  %v148_v21 = vld [vmem:[#allocation6 + $0x38] sm:$0xff]  ;;  %v98_v22 = vld [vmem:[#allocation4 + $0x10] sm:$0xff] }
  0x1f   :  { %v147_v23 = vld [vmem:[#allocation6 + $0x30] sm:$0xff]  ;;  %v97_v24 = vld [vmem:[#allocation4 + $0x8] sm:$0xff]  ;;  %v96_v26 = vld [vmem:[#allocation4] sm:$0xff] }
  0x20   :  { %120 = vmatpush.msra.mxu0 %v107_v4  ;;  %164 = vmatpush.msra.mxu1 %v153_v11  ;;  %v146_v25 = vld [vmem:[#allocation6 + $0x28] sm:$0xff]  ;;  %v145_v27 = vld [vmem:[#allocation6 + $0x20] sm:$0xff]  ;;  %v144_v29 = vld [vmem:[#allocation6 + $0x18] sm:$0xff] }
  0x21   :  { %v94_v28 = vld [vmem:[%s477_s1] sm:$0xff]  ;;  %v95_v30 = vld [vmem:[%s477_s1 + $0x8] sm:$0xff]  ;;  %v143_v31 = vld [vmem:[#allocation6 + $0x10] sm:$0xff] }
  0x22   :  { %121 = vmatpush.msra.mxu0 %v106_v5  ;;  %165 = vmatpush.msra.mxu1 %v152_v13  ;;  %v142_v32 = vld [vmem:[#allocation6 + $0x8] sm:$0xff]  ;;  %v141_v33 = vld [vmem:[#allocation6] sm:$0xff]  ;;  %v202_v34 = vld [vmem:[#allocation6 + $0xf8] sm:$0xff] }
  0x23   :  { %v201_v35 = vld [vmem:[#allocation6 + $0xf0] sm:$0xff]  ;;  %208 = vmatpush.msra.mxu2 %v202_v34  ;;  %v200_v36 = vld [vmem:[#allocation6 + $0xe8] sm:$0xff]  ;;  %v199_v37 = vld [vmem:[#allocation6 + $0xe0] sm:$0xff] }
  0x24   :  { %122 = vmatpush.msra.mxu0 %v105_v8  ;;  %166 = vmatpush.msra.mxu1 %v151_v15  ;;  %v198_v38 = vld [vmem:[#allocation6 + $0xd8] sm:$0xff]  ;;  %v197_v39 = vld [vmem:[#allocation6 + $0xd0] sm:$0xff]  ;;  %v196_v40 = vld [vmem:[#allocation6 + $0xc8] sm:$0xff] }
  0x25   :  { %209 = vmatpush.msra.mxu2 %v201_v35  ;;  %v195_v41 = vld [vmem:[#allocation6 + $0xc0] sm:$0xff]  ;;  %v194_v42 = vld [vmem:[#allocation6 + $0xb8] sm:$0xff]  ;;  %v193_v44 = vld [vmem:[#allocation6 + $0xb0] sm:$0xff] }
  0x26   :  { %123 = vmatpush.msra.mxu0 %v104_v10  ;;  %167 = vmatpush.msra.mxu1 %v150_v17  ;;  %v298_v43 = vld [vmem:[%s479_s3] ss:$0 sm:$0xff]  ;;  %v192_v45 = vld [vmem:[#allocation6 + $0xa8] sm:$0xff]  ;;  %v190_v50 = vld [vmem:[#allocation6 + $0x98] sm:$0xff] }
  0x27   :  { %210 = vmatpush.msra.mxu2 %v200_v36  ;;  %v191_v48 = vld [vmem:[#allocation6 + $0xa0] sm:$0xff]  ;;  %v189_v54 = vld [vmem:[#allocation6 + $0x90] sm:$0xff]  ;;  %v188_v55 = vld [vmem:[#allocation6 + $0x88] sm:$0xff] }
  0x28   :  { %124 = vmatpush.msra.mxu0 %v103_v12  ;;  %168 = vmatpush.msra.mxu1 %v149_v19  ;;  %v187_v56 = vld [vmem:[#allocation6 + $0x80] sm:$0xff]  ;;  %v248_v57 = vld [vmem:[#allocation8 + $0x78] sm:$0xff]  ;;  %v247_v58 = vld [vmem:[#allocation8 + $0x70] sm:$0xff] }
  0x29   :  { %211 = vmatpush.msra.mxu2 %v199_v37  ;;  %253 = vmatpush.msra.mxu3 %v248_v57  ;;  %v246_v59 = vld [vmem:[#allocation8 + $0x68] sm:$0xff]  ;;  %v245_v60 = vld [vmem:[#allocation8 + $0x60] sm:$0xff]  ;;  %v244_v61 = vld [vmem:[#allocation8 + $0x58] sm:$0xff] }
  0x2a   :  { %125 = vmatpush.msra.mxu0 %v102_v14  ;;  %169 = vmatpush.msra.mxu1 %v148_v21  ;;  %v243_v62 = vld [vmem:[#allocation8 + $0x50] sm:$0xff]  ;;  %v242_v63 = vld [vmem:[#allocation8 + $0x48] sm:$0xff]  ;;  %v241_v0 = vld [vmem:[#allocation8 + $0x40] sm:$0xff] }
  0x2b   :  { %212 = vmatpush.msra.mxu2 %v198_v38  ;;  %254 = vmatpush.msra.mxu3 %v247_v58  ;;  %v240_v1 = vld [vmem:[#allocation8 + $0x38] sm:$0xff]  ;;  %v299_v2 = vld [vmem:[%s481_s5] ss:$0 sm:$0xff]  ;;  %v239_v3 = vld [vmem:[#allocation8 + $0x30] sm:$0xff] }
  0x2c   :  { %126 = vmatpush.msra.mxu0 %v101_v16  ;;  %170 = vmatpush.msra.mxu1 %v147_v23  ;;  %v238_v4 = vld [vmem:[#allocation8 + $0x28] sm:$0xff]  ;;  %v237_v7 = vld [vmem:[#allocation8 + $0x20] sm:$0xff]  ;;  %v236_v9 = vld [vmem:[#allocation8 + $0x18] sm:$0xff] }
  0x2d   :  { %213 = vmatpush.msra.mxu2 %v197_v39  ;;  %255 = vmatpush.msra.mxu3 %v246_v59  ;;  %v235_v13 = vld [vmem:[#allocation8 + $0x10] sm:$0xff]  ;;  %v234_v14 = vld [vmem:[#allocation8 + $0x8] sm:$0xff]  ;;  %v233_v15 = vld [vmem:[#allocation8] sm:$0xff] }
  0x2e   :  { %127 = vmatpush.msra.mxu0 %v100_v18  ;;  %171 = vmatpush.msra.mxu1 %v146_v25  ;;  %v300_v16 = vld [vmem:[%s481_s5 + $0x1] ss:$0 sm:$0xff]  ;;  %v301_v23 = vld [vmem:[%s92_s4] ss:$0 sm:$0xff] }
  0x2f   :  { %214 = vmatpush.msra.mxu2 %v196_v40  ;;  %256 = vmatpush.msra.mxu3 %v245_v60 }
  0x30   :  { %128 = vmatpush.msra.mxu0 %v99_v20  ;;  %172 = vmatpush.msra.mxu1 %v145_v27 }
  0x31   :  { %215 = vmatpush.msra.mxu2 %v195_v41  ;;  %257 = vmatpush.msra.mxu3 %v244_v61 }
  0x32   :  { %129 = vmatpush.msra.mxu0 %v98_v22  ;;  %173 = vmatpush.msra.mxu1 %v144_v29 }
  0x33   :  { %216 = vmatpush.msra.mxu2 %v194_v42  ;;  %258 = vmatpush.msra.mxu3 %v243_v62 }
  0x34   :  { %130 = vmatpush.msra.mxu0 %v97_v24  ;;  %174 = vmatpush.msra.mxu1 %v143_v31 }
  0x35   :  { %217 = vmatpush.msra.mxu2 %v193_v44  ;;  %259 = vmatpush.msra.mxu3 %v242_v63 }
  0x36   :  { %131 = vmatpush.msra.mxu0 %v96_v26  ;;  %175 = vmatpush.msra.mxu1 %v142_v32 }
  0x37   :  { %132 = vmatmul.f32.vlgmr.msra.gmra.mxu0 %v94_v28  ;;  %218 = vmatpush.msra.mxu2 %v192_v45 }
  0x38   :  { %176 = vmatpush.msra.mxu1 %v141_v33  ;;  %260 = vmatpush.msra.mxu3 %v241_v0 }
  0x39   :  { %219 = vmatpush.msra.mxu2 %v191_v48 }
  0x3a   :  { %261 = vmatpush.msra.mxu3 %v240_v1 }
  0x3b   :  { %220 = vmatpush.msra.mxu2 %v190_v50 }
  0x3c   :  { %262 = vmatpush.msra.mxu3 %v239_v3 }
  0x3d   :  { %221 = vmatpush.msra.mxu2 %v189_v54 }
  0x3e   :  { %263 = vmatpush.msra.mxu3 %v238_v4 }
  0x3f   :  { %135 = vmatmul.f32.gmra.mxu0 %v95_v30  ;;  %222 = vmatpush.msra.mxu2 %v188_v55 }
  0x40   :  { %264 = vmatpush.msra.mxu3 %v237_v7 }
  0x41   :  { %223 = vmatpush.msra.mxu2 %v187_v56 }
  0x42   :  { %265 = vmatpush.msra.mxu3 %v236_v9 }
  0x44   :  { %266 = vmatpush.msra.mxu3 %v235_v13 }
  0x46   :  { %267 = vmatpush.msra.mxu3 %v234_v14 }
  0x48   :  { %268 = vmatpush.msra.mxu3 %v233_v15 }
  0xb4   :  { %v133_v46 = vpop.f32.mrf.mxu0 }
  0xb5   :  { %v134_v47 = vadd.f32 %v298_v43, %v133_v46 }
  0xb7   :  { %v139_v49 = vmax.f32 %v134_v47, 0.0 }
  0xb9   :  { %177 = vmatmul.f32.vlgmr.msra.gmra.mxu1 %v139_v49 }
  0xbc   :  { %v136_v51 = vpop.f32.mrf.mxu0 }
  0xbd   :  { %v137_v52 = vadd.f32 %v298_v43, %v136_v51 }
  0xbf   :  { %v140_v53 = vmax.f32 %v137_v52, 0.0 }
  0xc1   :  { %180 = vmatmul.f32.gmra.mxu1 %v140_v53 }
 0x136   :  { %v178_v5 = vpop.f32.mrf.mxu1 }
 0x137   :  { %v179_v6 = vadd.f32 %v299_v2, %v178_v5 }
 0x139   :  { %v184_v8 = vmax.f32 %v179_v6, 0.0 }
 0x13b   :  { %224 = vmatmul.f32.vlgmr.msra.gmra.mxu2 %v184_v8 }
 0x13e   :  { %v181_v10 = vpop.f32.mrf.mxu1 }
 0x13f   :  { %v182_v11 = vadd.f32 %v299_v2, %v181_v10 }
 0x141   :  { %v185_v12 = vmax.f32 %v182_v11, 0.0 }
 0x143   :  { %227 = vmatmul.f32.gmra.mxu2 %v185_v12 }
 0x1be   :  { %v225_v17 = vpop.f32.mrf.mxu2 }
 0x1bf   :  { %v226_v18 = vadd.f32 %v300_v16, %v225_v17 }
 0x1c1   :  { %v231_v19 = vmax.f32 %v226_v18, 0.0 }
 0x1c3   :  { %269 = vmatmul.f32.vlgmr.msra.gmra.mxu3 %v231_v19 }
 0x1c6   :  { %v228_v20 = vpop.f32.mrf.mxu2 }
 0x1c7   :  { %v229_v21 = vadd.f32 %v300_v16, %v228_v20 }
 0x1c9   :  { %v232_v22 = vmax.f32 %v229_v21, 0.0 }
 0x1cb   :  { %272 = vmatmul.f32.gmra.mxu3 %v232_v22 }
 0x246   :  { %v270_v24 = vpop.f32.mrf.mxu3 }
 0x247   :  { %v271_v25 = vadd.f32 %v301_v23, %v270_v24 }
 0x249   :  { %276 = vst [vmem:[%s484_s8] sm:$0xff] %v271_v25 }
 0x24e   :  { %v273_v26 = vpop.f32.mrf.mxu3 }
 0x24f   :  { %v274_v27 = vadd.f32 %v301_v23, %v273_v26 }
 0x251   :  { %277 = vst [vmem:[%s484_s8 + $0x8] sm:$0xff] %v274_v27 }
 0x252   :  { %282 = vsyncpa [#allocation5], 1 }
 0x253   :  { %283 = vsyncpa [#allocation7], 1 }

</bundles_post_ra>
